<compile_context>
chip_gen: v6e
topology: v6e:2x2x1
jax: 0.10.0
libtpu: 0.0.40
codegen_flags: <defaults>
</compile_context>

<pallas_src>
import functools

import jax
import jax.numpy as jnp
from jax import lax
from jax.experimental import pallas as pl
from jax.experimental.pallas import tpu as pltpu

IGNORE_INDEX = 255


def _edge_ce_kernel(out_ref, lab_ref, lw_ref, sk_ref, w_ref, acc_ref, *, dhw):
    i = pl.program_id(1)
    tn = out_ref.shape[-1]

    logits = out_ref[...].astype(jnp.float32)      # (C,  TN)  lane-dense
    sk = sk_ref[...].astype(jnp.float32)           # (Cs, TN)
    lab = lab_ref[...].astype(jnp.int32)           # (1,  TN)  uint8 -> int32
    lw = lw_ref[...].astype(jnp.int32)             # (1,  TN)
    w = w_ref[...].astype(jnp.float32)             # (C,  1)

    cs = sk.shape[0]

    # argmax over sketch channels (sublane axis); Cs==2 fast path.
    if cs == 2:
        # strict '>' keeps index 0 on ties -> matches torch first-index tie-break
        pred = (sk[1:2, :] > sk[0:1, :]).astype(jnp.int32)            # (1, TN)
    else:
        mx = jnp.max(sk, axis=0, keepdims=True)
        cs_iota = lax.broadcasted_iota(jnp.int32, sk.shape, 0)
        pred = jnp.min(jnp.where(sk == mx, cs_iota, jnp.int32(2 ** 30)),
                       axis=0, keepdims=True).astype(jnp.int32)

    # edges = sketch_pred & label_weight  (bitwise AND, as in PyTorch)
    edge = jnp.bitwise_and(pred, lw) != 0                             # (1, TN) bool

    # Ragged-tail mask for the last (possibly out-of-bounds) block.  Must be a
    # select, not a multiply, so unspecified tail data can't inject Inf/NaN.
    in_bounds = (i * tn + lax.broadcasted_iota(jnp.int32, (1, tn), 1)) < dhw
    sel = jnp.logical_and(edge, in_bounds)                            # (1, TN)

    # log-softmax pieces over the channel (sublane) axis, reduced early:
    # the full (C, TN) log-prob tensor is never materialized.
    m = jnp.max(logits, axis=0, keepdims=True)                        # (1, TN)
    z = logits - m                                                    # (C, TN)
    lse = jnp.log(jnp.sum(jnp.exp(z), axis=0, keepdims=True))         # (1, TN)

    cls = lax.broadcasted_iota(jnp.int32, logits.shape, 0)            # (C, TN)
    hit = lab == cls                                                  # (C, TN)
    picked_z = jnp.sum(jnp.where(hit, z, 0.0), axis=0, keepdims=True)  # z[y]
    w_picked = jnp.sum(jnp.where(hit, w, 0.0), axis=0, keepdims=True)  # w[y]
    # w[y] * logp[y]; label==255 never matches -> w_picked==0 -> contribution 0
    contrib = (picked_z - lse) * w_picked                             # (1, TN)

    loss_tot = -jnp.sum(jnp.where(sel, contrib, 0.0))
    cnt_tot = jnp.sum(jnp.where(sel, 1.0, 0.0))

    # One fused lane-dense (2, 128) partial-result block per (b, chunk).
    row = lax.broadcasted_iota(jnp.int32, (2, 128), 0)
    acc_ref[...] = jnp.where(row == 0, loss_tot, cnt_tot)


def edge_ce_loss(output, label, label_weight, sketch_from_pred, class_weight,
                 *, threshold=1, tile_n=65536):
    B, C, D, H, W = output.shape
    Cs = sketch_from_pred.shape[1]
    DHW = D * H * W
    assert class_weight.shape[-1] == C

    # Native NCDHW layout; reshapes are free (contiguous), no transpose, no pad.
    # Logits / sketch keep their source dtype (bf16 passes straight through).
    out3 = output.reshape(B, C, DHW)
    sk3 = sketch_from_pred.reshape(B, Cs, DHW)
    # label fits 0..255 (incl. ignore_index=255); label_weight is 0/1.
    # Float label_weight is truncated exactly like torch's .int().
    lab3 = label.reshape(B, 1, DHW).astype(jnp.uint8)
    lw3 = label_weight.reshape(B, 1, DHW).astype(jnp.uint8)
    w2 = class_weight.reshape(C, 1).astype(jnp.float32)

    # Lane axis: multiple of 128, clamped to the (rounded-up) problem size.
    dhw_up = ((DHW + 127) // 128) * 128
    tile_n = max(128, min((tile_n // 128) * 128, dhw_up))
    n_chunks = pl.cdiv(DHW, tile_n)
    grid = (B, n_chunks)

    kernel = functools.partial(_edge_ce_kernel, dhw=DHW)

    acc = pl.pallas_call(
        kernel,
        out_shape=jax.ShapeDtypeStruct((B, n_chunks, 2, 128), jnp.float32),
        grid_spec=pltpu.PrefetchScalarGridSpec(
            num_scalar_prefetch=0,
            grid=grid,
            in_specs=[
                pl.BlockSpec((None, C, tile_n), lambda b, i: (b, 0, i)),   # logits
                pl.BlockSpec((None, 1, tile_n), lambda b, i: (b, 0, i)),   # label (u8)
                pl.BlockSpec((None, 1, tile_n), lambda b, i: (b, 0, i)),   # label_weight (u8)
                pl.BlockSpec((None, Cs, tile_n), lambda b, i: (b, 0, i)),  # sketch
                pl.BlockSpec((C, 1), lambda b, i: (0, 0)),                 # class weight
            ],
            out_specs=pl.BlockSpec((None, None, 2, 128),
                                   lambda b, i: (b, i, 0, 0)),
        ),
        compiler_params=pltpu.CompilerParams(
            dimension_semantics=("parallel", "parallel"),
            vmem_limit_bytes=40 * 1024 * 1024,
        ),
    )(out3, lab3, lw3, sk3, w2)

    loss_sum = jnp.sum(acc[:, :, 0, 0])
    count = jnp.sum(acc[:, :, 1, 0])
    valid = count >= jnp.float32(threshold)      # torch returns False if < threshold
    loss = jnp.where(valid, loss_sum / jnp.maximum(count, 1.0), jnp.float32(0.0))
    return loss, valid


def edge_ce_loss_ref(output, label, label_weight, sketch_from_pred, class_weight,
                     threshold=1):
    # pure-JAX reference matching the PyTorch module
    # (reduction='none' CE with weight + ignore_index, then mean over selected)
    B, C = output.shape[0], output.shape[1]
    pred = jnp.argmax(sketch_from_pred, axis=1).reshape(B, -1).astype(jnp.int32)
    lw = label_weight.reshape(B, -1).astype(jnp.int32)
    edges = (pred & lw).reshape(-1)
    sel = (edges != 0).astype(jnp.float32)
    logits = jnp.transpose(output, (0, 2, 3, 4, 1)).reshape(-1, C)
    lab = label.reshape(-1)
    logp = jax.nn.log_softmax(logits, axis=-1)
    not_ignored = lab != IGNORE_INDEX
    safe_lab = jnp.where(not_ignored, lab, 0)
    picked = jnp.take_along_axis(logp, safe_lab[:, None], axis=-1)[:, 0]
    w_i = class_weight[safe_lab]
    per = -w_i * picked * not_ignored.astype(jnp.float32)
    count = jnp.sum(sel)
    loss = jnp.sum(per * sel) / jnp.maximum(count, 1.0)
    valid = count >= threshold
    return jnp.where(valid, loss, 0.0), valid


if __name__ == "__main__":
    key = jax.random.PRNGKey(0)
    k1, k2, k3, k4, k5 = jax.random.split(key, 5)

    B, C, D, H, W = 2, 12, 4, 9, 8   # DHW = 288 (not a multiple of 128 -> ragged tail)
    Cs = 2                           # binary sketch prediction channels

    output = jax.random.normal(k1, (B, C, D, H, W), jnp.float32)
    sketch_from_pred = jax.random.normal(k2, (B, Cs, D, H, W), jnp.float32)
    label = jax.random.randint(k3, (B, D, H, W), 0, C).astype(jnp.int32)
    ignore = jax.random.uniform(k4, (B, D, H, W)) < 0.1
    label = jnp.where(ignore, IGNORE_INDEX, label)
    label_weight = jax.random.bernoulli(k5, 0.5, (B, D * H * W)).astype(jnp.int32)
    # deterministic class weights (nn.CrossEntropyLoss `weight`, shape (12,))
    class_weight = 0.5 + jnp.arange(C, dtype=jnp.float32) / C

    ref_loss, ref_flag = edge_ce_loss_ref(output, label, label_weight,
                                          sketch_from_pred, class_weight)

    # Default tile (single inner chunk, ragged tail masked in-kernel) ...
    loss, flag = edge_ce_loss(output, label, label_weight, sketch_from_pred,
                              class_weight)
    # ... and a small tile to exercise the multi-chunk + ragged-last-chunk path.
    loss_small, flag_small = edge_ce_loss(output, label, label_weight,
                                          sketch_from_pred, class_weight,
                                          tile_n=128)
    jax.block_until_ready((loss, flag, loss_small, flag_small))

    assert bool(flag) == bool(ref_flag)
    assert bool(flag_small) == bool(ref_flag)
    assert abs(float(loss) - float(ref_loss)) < 1e-4, (float(loss), float(ref_loss))
    assert abs(float(loss_small) - float(ref_loss)) < 1e-4, (float(loss_small),
                                                             float(ref_loss))
    print("KERNEL_OK")
</pallas_src>

<mosaic_0001>
module attributes {stable_mosaic.version = 11 : i64} {
  func.func @_edge_ce_kernel(%arg0: i32, %arg1: i32, %arg2: memref<1x12x384xf32, #tpu.memory_space<vmem>>, %arg3: memref<1x1x384xi8, #tpu.memory_space<vmem>>, %arg4: memref<1x1x384xi8, #tpu.memory_space<vmem>>, %arg5: memref<1x2x384xf32, #tpu.memory_space<vmem>>, %arg6: memref<12x1xf32, #tpu.memory_space<vmem>>, %arg7: memref<1x1x2x128xf32, #tpu.memory_space<vmem>>) attributes {dimension_semantics = [#tpu.dimension_semantics<parallel>, #tpu.dimension_semantics<parallel>], iteration_bounds = array<i64: 2, 1>, scalar_prefetch = 0 : i64, scratch_operands = 0 : i64, tpu.core_type = #tpu.core_type<tc>, window_params = [{transform_indices = @transform_0, window_bounds = array<i64: 1, 12, 384>}, {transform_indices = @transform_1, window_bounds = array<i64: 1, 1, 384>}, {transform_indices = @transform_2, window_bounds = array<i64: 1, 1, 384>}, {transform_indices = @transform_3, window_bounds = array<i64: 1, 2, 384>}, {pipeline_mode = #tpu.pipeline_mode<synchronous>, transform_indices = @transform_4, window_bounds = array<i64: 12, 1>}, {transform_indices = @transform_5, window_bounds = array<i64: 1, 1, 2, 128>}]} {
    %c0 = arith.constant 0 : index
    %c0_0 = arith.constant 0 : index
    %c0_1 = arith.constant 0 : index
    %0 = vector.load %arg2[%c0, %c0_0, %c0_1] : memref<1x12x384xf32, #tpu.memory_space<vmem>>, vector<1x12x384xf32>
    %1 = vector.shape_cast %0 : vector<1x12x384xf32> to vector<12x384xf32>
    %c0_2 = arith.constant 0 : index
    %c0_3 = arith.constant 0 : index
    %c0_4 = arith.constant 0 : index
    %2 = vector.load %arg5[%c0_2, %c0_3, %c0_4] : memref<1x2x384xf32, #tpu.memory_space<vmem>>, vector<1x2x384xf32>
    %3 = vector.shape_cast %2 : vector<1x2x384xf32> to vector<2x384xf32>
    %c0_5 = arith.constant 0 : index
    %c0_6 = arith.constant 0 : index
    %c0_7 = arith.constant 0 : index
    %4 = vector.load %arg3[%c0_5, %c0_6, %c0_7] : memref<1x1x384xi8, #tpu.memory_space<vmem>>, vector<1x1x384xi8>
    %5 = vector.shape_cast %4 : vector<1x1x384xi8> to vector<1x384xi8>
    %6 = arith.extui %5 : vector<1x384xi8> to vector<1x384xi32>
    %c0_8 = arith.constant 0 : index
    %c0_9 = arith.constant 0 : index
    %c0_10 = arith.constant 0 : index
    %7 = vector.load %arg4[%c0_8, %c0_9, %c0_10] : memref<1x1x384xi8, #tpu.memory_space<vmem>>, vector<1x1x384xi8>
    %8 = vector.shape_cast %7 : vector<1x1x384xi8> to vector<1x384xi8>
    %9 = arith.extui %8 : vector<1x384xi8> to vector<1x384xi32>
    %c0_11 = arith.constant 0 : index
    %c0_12 = arith.constant 0 : index
    %10 = vector.load %arg6[%c0_11, %c0_12] : memref<12x1xf32, #tpu.memory_space<vmem>>, vector<12x1xf32>
    %11 = vector.extract_strided_slice %3 {offsets = [1, 0], sizes = [1, 384], strides = [1, 1]} : vector<2x384xf32> to vector<1x384xf32>
    %12 = vector.extract_strided_slice %3 {offsets = [0, 0], sizes = [1, 384], strides = [1, 1]} : vector<2x384xf32> to vector<1x384xf32>
    %13 = arith.cmpf ogt, %11, %12 : vector<1x384xf32>
    %14 = arith.extui %13 : vector<1x384xi1> to vector<1x384xi32>
    %15 = arith.andi %14, %9 : vector<1x384xi32>
    %c0_i32 = arith.constant 0 : i32
    %16 = vector.broadcast %c0_i32 : i32 to vector<1x384xi32>
    %17 = arith.cmpi ne, %15, %16 : vector<1x384xi32>
    %c384_i32 = arith.constant 384 : i32
    %18 = arith.muli %arg1, %c384_i32 : i32
    %19 = tpu.iota {dimensions = array<i32: 1>} : vector<1x384xi32>
    %20 = vector.broadcast %18 : i32 to vector<1x384xi32>
    %21 = arith.addi %20, %19 : vector<1x384xi32>
    %c288_i32 = arith.constant 288 : i32
    %22 = vector.broadcast %c288_i32 : i32 to vector<1x384xi32>
    %23 = arith.cmpi slt, %21, %22 : vector<1x384xi32>
    %24 = arith.andi %17, %23 : vector<1x384xi1>
    %cst = arith.constant dense<0xFF800000> : vector<384xf32>
    %25 = vector.multi_reduction <maximumf>, %1, %cst [0] : vector<12x384xf32> to vector<384xf32>
    %26 = vector.shape_cast %25 : vector<384xf32> to vector<1x384xf32>
    %27 = vector.broadcast %26 : vector<1x384xf32> to vector<12x384xf32>
    %28 = arith.subf %1, %27 : vector<12x384xf32>
    %29 = math.exp %28 : vector<12x384xf32>
    %cst_13 = arith.constant dense<0.000000e+00> : vector<384xf32>
    %30 = vector.multi_reduction <add>, %29, %cst_13 [0] : vector<12x384xf32> to vector<384xf32>
    %31 = vector.shape_cast %30 : vector<384xf32> to vector<1x384xf32>
    %32 = math.log %31 : vector<1x384xf32>
    %33 = tpu.iota {dimensions = array<i32: 0>} : vector<12x384xi32>
    %34 = vector.broadcast %6 : vector<1x384xi32> to vector<12x384xi32>
    %35 = arith.cmpi eq, %34, %33 : vector<12x384xi32>
    %cst_14 = arith.constant 0.000000e+00 : f32
    %36 = vector.broadcast %cst_14 : f32 to vector<12x384xf32>
    %37 = arith.select %35, %28, %36 : vector<12x384xi1>, vector<12x384xf32>
    %cst_15 = arith.constant dense<0.000000e+00> : vector<384xf32>
    %38 = vector.multi_reduction <add>, %37, %cst_15 [0] : vector<12x384xf32> to vector<384xf32>
    %39 = vector.shape_cast %38 : vector<384xf32> to vector<1x384xf32>
    %cst_16 = arith.constant 0.000000e+00 : f32
    %40 = vector.shape_cast %10 : vector<12x1xf32> to vector<12x1xf32>
    %41 = vector.broadcast %40 : vector<12x1xf32> to vector<12x384xf32>
    %42 = vector.broadcast %cst_16 : f32 to vector<12x384xf32>
    %43 = arith.select %35, %41, %42 : vector<12x384xi1>, vector<12x384xf32>
    %cst_17 = arith.constant dense<0.000000e+00> : vector<384xf32>
    %44 = vector.multi_reduction <add>, %43, %cst_17 [0] : vector<12x384xf32> to vector<384xf32>
    %45 = vector.shape_cast %44 : vector<384xf32> to vector<1x384xf32>
    %46 = arith.subf %39, %32 : vector<1x384xf32>
    %47 = arith.mulf %46, %45 : vector<1x384xf32>
    %cst_18 = arith.constant 0.000000e+00 : f32
    %48 = vector.broadcast %cst_18 : f32 to vector<1x384xf32>
    %49 = arith.select %24, %47, %48 : vector<1x384xi1>, vector<1x384xf32>
    %50 = vector.shape_cast %49 : vector<1x384xf32> to vector<1x1x384xf32>
    %cst_19 = arith.constant dense<0.000000e+00> : vector<1xf32>
    %51 = vector.multi_reduction <add>, %50, %cst_19 [1, 2] : vector<1x1x384xf32> to vector<1xf32>
    %52 = vector.shape_cast %51 : vector<1xf32> to vector<1x1x1xf32>
    %53 = vector.extract %52[0, 0, 0] : f32 from vector<1x1x1xf32>
    %cst_20 = arith.constant 0.000000e+00 : f32
    %54 = arith.subf %cst_20, %53 : f32
    %cst_21 = arith.constant 1.000000e+00 : f32
    %cst_22 = arith.constant 0.000000e+00 : f32
    %55 = vector.broadcast %cst_21 : f32 to vector<1x384xf32>
    %56 = vector.broadcast %cst_22 : f32 to vector<1x384xf32>
    %57 = arith.select %24, %55, %56 : vector<1x384xi1>, vector<1x384xf32>
    %58 = vector.shape_cast %57 : vector<1x384xf32> to vector<1x1x384xf32>
    %cst_23 = arith.constant dense<0.000000e+00> : vector<1xf32>
    %59 = vector.multi_reduction <add>, %58, %cst_23 [1, 2] : vector<1x1x384xf32> to vector<1xf32>
    %60 = vector.shape_cast %59 : vector<1xf32> to vector<1x1x1xf32>
    %61 = vector.extract %60[0, 0, 0] : f32 from vector<1x1x1xf32>
    %62 = tpu.iota {dimensions = array<i32: 0>} : vector<2x128xi32>
    %c0_i32_24 = arith.constant 0 : i32
    %63 = vector.broadcast %c0_i32_24 : i32 to vector<2x128xi32>
    %64 = arith.cmpi eq, %62, %63 : vector<2x128xi32>
    %65 = vector.broadcast %54 : f32 to vector<2x128xf32>
    %66 = vector.broadcast %61 : f32 to vector<2x128xf32>
    %67 = arith.select %64, %65, %66 : vector<2x128xi1>, vector<2x128xf32>
    %c0_25 = arith.constant 0 : index
    %c0_26 = arith.constant 0 : index
    %c0_27 = arith.constant 0 : index
    %c0_28 = arith.constant 0 : index
    %68 = vector.load %arg7[%c0_25, %c0_26, %c0_27, %c0_28] : memref<1x1x2x128xf32, #tpu.memory_space<vmem>>, vector<1x1x2x128xf32>
    %69 = vector.shape_cast %68 : vector<1x1x2x128xf32> to vector<2x128xf32>
    %70 = vector.shape_cast %67 : vector<2x128xf32> to vector<1x1x2x128xf32>
    tpu.vector_store %arg7[%c0_25, %c0_26, %c0_27, %c0_28], %70 {strides = array<i32>} : memref<1x1x2x128xf32, #tpu.memory_space<vmem>>, vector<1x1x2x128xf32>,
    return
  }
  func.func @transform_0(%arg0: i32, %arg1: i32) -> (i32, i32, i32) {
    %c0_i32 = arith.constant 0 : i32
    %c0_i32_0 = arith.constant 0 : i32
    return %arg0, %c0_i32, %arg1 : i32, i32, i32
  }
  func.func @transform_1(%arg0: i32, %arg1: i32) -> (i32, i32, i32) {
    %c0_i32 = arith.constant 0 : i32
    %c0_i32_0 = arith.constant 0 : i32
    return %arg0, %c0_i32, %arg1 : i32, i32, i32
  }
  func.func @transform_2(%arg0: i32, %arg1: i32) -> (i32, i32, i32) {
    %c0_i32 = arith.constant 0 : i32
    %c0_i32_0 = arith.constant 0 : i32
    return %arg0, %c0_i32, %arg1 : i32, i32, i32
  }
  func.func @transform_3(%arg0: i32, %arg1: i32) -> (i32, i32, i32) {
    %c0_i32 = arith.constant 0 : i32
    %c0_i32_0 = arith.constant 0 : i32
    return %arg0, %c0_i32, %arg1 : i32, i32, i32
  }
  func.func @transform_4(%arg0: i32, %arg1: i32) -> (i32, i32) {
    %c0_i32 = arith.constant 0 : i32
    %c0_i32_0 = arith.constant 0 : i32
    %c0_i32_1 = arith.constant 0 : i32
    return %c0_i32, %c0_i32_0 : i32, i32
  }
  func.func @transform_5(%arg0: i32, %arg1: i32) -> (i32, i32, i32, i32) {
    %c0_i32 = arith.constant 0 : i32
    %c0_i32_0 = arith.constant 0 : i32
    %c0_i32_1 = arith.constant 0 : i32
    return %arg0, %arg1, %c0_i32, %c0_i32_0 : i32, i32, i32, i32
  }
}

</mosaic_0001>

<bundles_post_ra>
// kernel: tpu_custom_call.1
= control target key start
LH: loop header
LB: loop body
LE: loop exit
PB: predicated region body
PF: predicated region fallthrough
CT: control target
= control target key end

     0   :  { %10 = vsyncpa [#allocation3], 0  ;;  %s1238_s0 = inlined_call_operand.vmem [shape: f32[2,12,288], index: 0, kind: input, shape index: {}]   ;;  %s1239_s1 = inlined_call_operand.vmem [shape: u8[2,1,288], index: 1, kind: input, shape index: {}]   ;;  %s1240_s2 = inlined_call_operand.vmem [shape: u8[2,1,288], index: 2, kind: input, shape index: {}]   ;;  %s1241_s3 = inlined_call_operand.vmem [shape: f32[2,2,288], index: 3, kind: input, shape index: {}]   ;;  %s1242_s4 = inlined_call_operand.vmem [shape: f32[12,1], index: 4, kind: input, shape index: {}]   ;;  %s1243_s5 = inlined_call_operand.hbm [shape: f32[2,1,2,128], index: 5, kind: output, shape index: {}]  }
   0x1   :  { %12 = vsyncpa [#allocation3 + $0x1], 0  ;;  %s1050_s18 = smov 0   ;;  %s1052_s19 = smov 0  }
   0x2   :  { %s1054_s20 = smov 0   ;;  %s1056_s21 = smov 0  }
   0x3   :  { %s1058_s22 = smov 0   ;;  %s1060_s23 = smov 0  }
   0x4 LB: > { %s840_s24 = sadd.s32 4294967295, %s1013_s23   ;;  %s841_s25 = sadd.s32 4294967294, %s1013_s23   ;;  %s1013_s23 = sphi %s1060_s23, %s18_s23   ;;  %s1009_s22 = sphi %s1058_s22, %s1252_s22   ;;  %s1005_s21 = sphi %s1056_s21, %s1251_s21   ;;  %s1001_s20 = sphi %s1054_s20, %s1250_s20   ;;  %s997_s19 = sphi %s1052_s19, %s1249_s19   ;;  %s993_s18 = sphi %s1050_s18, %s1248_s18  }
   0x5   : > { %s30_s26 = sadd.s32 1, %s1009_s22  ;;  %s172_s27 = sadd.s32 1, %s1001_s20 }
   0x6   : > { %p32_p0 = scmp.ge.s32.totalorder %s30_s26, 2  ;;  %p182_p1 = scmp.ne.s32.totalorder %s1001_s20, %s997_s19 }
   0x7   : > { %p183_p2 = scmp.eq.s32.totalorder %s840_s24, 1  ;;  %p188_p3 = scmp.ne.s32.totalorder %s997_s19, %s993_s18 }
   0x8   : > { %s1254_s26 = smov (%p32_p0, %s30_s26), 0  ;;  %p189_p5 = scmp.eq.s32.totalorder %s841_s25, 1 }
   0x9   : > { %p1090_p4 = por %p183_p2, %p182_p1  ;;  %s167_s29 = ssub.s32 %s1009_s22, %s1254_s26 }
   0xa   : > { %p844_p6 = scmp.ge.s32.totalorder %s1013_s23, 1  ;;  %p170_p7 = scmp.eq.s32.totalorder %s167_s29, 0 }
   0xb   : > { %p1097_p8 = por %p189_p5, %p188_p3  ;;  %p260_p9 = scmp.lt.s32.totalorder %s1013_s23, 3 }
   0xc   : > { %s1103_s6 = scalar_select %p170_p7, %s1001_s20, %s172_s27  }
   0xd   : > { %p261_p10 = pnand %p844_p6, %p260_p9 }
   0xe   : > { %p318_p11 = scmp.lt.s32.totalorder (!%p261_p10), %s1005_s21, 1 }
   0xf   : > { %264 = sbr.rel (%p261_p10) target bundleno = 402 (0x192), region = 40 }
  0x14   : > { %v382_v0 = vlaneseq  ;;  %v1015_v1 = vmov 1983009808   ;;  %v1016_v3 = vmov 0   ;;  %v373_v4 = vld [vmem:[%s1242_s4 + $0x8] sm:$0xf]  ;;  %s1110_s9 = scalar_select %p318_p11, %s1005_s21, 1 }
  0x15   : > { %v380_v2 = vunpack.c.l.s4 %v1015_v1  ;;  %918 = vset.pattern.permute.xlu0 %v1016_v3  ;;  %v372_v7 = vld [vmem:[%s1242_s4] sm:$0xff]  ;;  %v1017_v10 = vmov 1   ;;  %vm431_vm5 = vcmask 1043456   ;;  %vm651_vm12 = vcmask 1040384  }
  0x16   : > { %v399_v5 = vand.u32 127, %v382_v0  ;;  %574 = vperm.xlu0 %918, %v373_v4   ;;  %v1115_v8 = vshrl.u32 %v382_v0, 7  ;;  %v412_v11 = vcombine.low %v1017_v10, %v1017_v10  ;;  %s853_s12 = smul.u32 3, %s1110_s9 }
  0x17   : > { %v381_v6 = vunpack.c.0.s8 %v380_v2  ;;  %s854_s13 = smul.u32 6, %s1110_s9 }
  0x18   : > { %v401_v9 = vadd.s32 256, %v399_v5  ;;  %s343_s16 = scalar_lea.vmem %s1240_s2, %s853_s12  ;;  %s852_s27 = smul.u32 48, %s1110_s9  ;;  %vm698_vm13 = vcmp.eq.s32.totalorder %v1115_v8, 0 }
  0x19   : > { %v1119_v12 = vsub.s32 %v381_v6, %v1115_v8  ;;  %s353_s25 = scalar_lea.vmem %s1241_s3, %s854_s13  ;;  %v367_v15 = vld [vmem:[%s343_s16] sm:$0x7]  ;;  %s334_s13 = scalar_lea.vmem %s1239_s1, %s853_s12 }
  0x1a   : > { %vm408_vm0 = vcmp.lt.s32.totalorder %v401_v9, 288  ;;  %569 = vperm.xlu0 %918, %v372_v7   ;;  %v361_v17 = vld [vmem:[%s353_s25] sm:$0x3f]  ;;  %v368_v18 = vunpack.c.0.s8 %v367_v15  ;;  %v369_v19 = vunpack.c.1.s8 %v367_v15  ;;  %s325_s8 = scalar_lea.vmem %s1238_s0, %s852_s27  ;;  %s314_s9 = sand.u32 1, %s997_s19  }
  0x1b   : > { %v411_v13 = vsel %vm408_vm0, 1, %v1016_v3  ;;  %v419_v14 = vrot.slane %v412_v11, %v1119_v12  ;;  %v375_v20 = vrot.slane %v361_v17, 7  ;;  %v358_v32 = vld [vmem:[%s325_s8 + $0x18] sm:$0xf]  ;;  %v359_v33 = vld [vmem:[%s325_s8 + $0x20] sm:$0xf] }
  0x1c   : > { %v426_v16 = vrot.slane %v411_v13, %v1119_v12  ;;  %v370_v21 = vand.u32 255, %v368_v18  ;;  %v371_v22 = vand.u32 255, %v369_v19  ;;  %v360_v34 = vld [vmem:[%s325_s8 + $0x28] sm:$0xf]  ;;  %v355_v35 = vld [vmem:[%s325_s8] sm:$0xff]  ;;  %v432_v36 = vsel %vm431_vm5, %v358_v32, -inf }
  0x1d   : > { %vm377_vm1 = vcmp.gt.f32.partialorder %v361_v17, %v375_v20  ;;  %v356_v37 = vld [vmem:[%s325_s8 + $0x8] sm:$0xff]  ;;  %v440_v38 = vsel %vm431_vm5, %v359_v33, -inf  ;;  %v357_v39 = vld [vmem:[%s325_s8 + $0x10] sm:$0xff]  ;;  %v448_v40 = vsel %vm431_vm5, %v360_v34, -inf  ;;  %v433_v41 = vmax.f32 %v355_v35, %v432_v36  ;;  %v362_v11 = vld [vmem:[%s334_s13] sm:$0x7] }
  0x1e   : > { %v427_v23 = vcombine.low %v419_v14, %v426_v16  ;;  %v378_v24 = vsel %vm377_vm1, 1, %v1016_v3  ;;  %v385_v25 = vrot.slane %v370_v21, %v1119_v12  ;;  %v392_v26 = vrot.slane %v371_v22, %v1119_v12  ;;  %s845_s12 = sshll.u32 %s314_s9, 1  ;;  %s849_s16 = sshll.u32 %s1005_s21, 5 }
  0x1f   : > { %v441_v42 = vmax.f32 %v356_v37, %v440_v38  ;;  %v449_v43 = vmax.f32 %v357_v39, %v448_v40  ;;  %v434_v44 = vrot.slane %v433_v41, 4  ;;  %v363_v15 = vunpack.c.0.s8 %v362_v11  ;;  %s316_s17 = scalar_lea.vmem [#allocation2], %s845_s12  ;;  %s1198_s7 = scalar_lea.hbm %s1243_s5, %s849_s16 }
  0x20   : > { %v393_v27 = vcombine.low %v385_v25, %v392_v26  ;;  %v428_v28 = vrot.slane %v427_v23, 7  ;;  %v364_v17 = vunpack.c.1.s8 %v362_v11  ;;  %v509_v23 = vsub.s32 0, %v1115_v8  ;;  %s718_s24 = sshll.u32 %s316_s17, 4  ;;  %s704_s8 = scalar_lea.sflag [#allocation3], %s314_s9  ;;  %s719_s24 = int_to_ptr.vmem [resolvable:$true] %s718_s24 }
  0x21   : > { %v442_v45 = vrot.slane %v441_v42, 4  ;;  %v450_v46 = vrot.slane %v449_v43, 4  ;;  %v435_v47 = vmax.f32 %v433_v41, %v434_v44  ;;  %v513_v26 = vsub.s32 4, %v1115_v8  ;;  %s937_s10 = scalar_lea.vmem %s719_s24, 32  ;;  %s1019_s21 = smov [#allocation2]  }
  0x22   : > { %v394_v29 = vrot.slane %v393_v27, 7  ;;  %vm429_vm2 = vcmp.ne.s32.totalorder %v428_v28, 0  ;;  %v366_v27 = vand.u32 255, %v364_v17  ;;  %v506_v38 = vadd.s32 8, %v1115_v8  ;;  %p938_p12 = scmp.ne.s32.totalorder %s719_s24, %s937_s10  ;;  %s941_s11 = sshll.u32 %s1019_s21, 4  ;;  %s942_s11 = int_to_ptr.vmem [resolvable:$false] %s941_s11 }
  0x23   : > { %v443_v48 = vmax.f32 %v441_v42, %v442_v45  ;;  %v451_v49 = vmax.f32 %v449_v43, %v450_v46  ;;  %v436_v50 = vrot.slane %v435_v47, 2  ;;  %s943_s13 = scalar_lea.vmem %s942_s11, 64  ;;  %p944_p1 = scmp.lt.s32.totalorder %s719_s24, %s942_s11 }
  0x24   : > { %v395_v30 = vand.u32 %v394_v29, %v378_v24  ;;  %v365_v24 = vand.u32 255, %v363_v15  ;;  %p939_p13 = pnand %p938_p12, %p1090_p4  ;;  %p945_p2 = scmp.lt.s32.totalorder %s943_s13, %s937_s10 }
  0x25   : > { %v444_v51 = vrot.slane %v443_v48, 2  ;;  %v452_v52 = vrot.slane %v451_v49, 2  ;;  %v437_v53 = vmax.f32 %v435_v47, %v436_v50 }
  0x26   : > { %vm396_vm3 = vcmp.ne.s32.totalorder %v395_v30, 0  ;;  %p940_p0 = pneg %p939_p13  ;;  %p946_p3 = por %p945_p2, %p944_p1 }
  0x27   : > { %vm1134_vm4 = vmand %vm396_vm3, %vm429_vm2  ;;  %v445_v54 = vmax.f32 %v443_v48, %v444_v51  ;;  %v453_v55 = vmax.f32 %v451_v49, %v452_v52  ;;  %v438_v56 = vrot.slane %v437_v53, 1 }
  0x28   : > { %p947_p5 = pnand %p946_p3, %p940_p0 }
  0x29   : > { %v446_v57 = vrot.slane %v445_v54, 1  ;;  %v454_v58 = vrot.slane %v453_v55, 1  ;;  %v439_v59 = vmax.f32 %v437_v53, %v438_v56 }
  0x2b   : > { %v447_v60 = vmax.f32 %v445_v54, %v446_v57  ;;  %v455_v61 = vmax.f32 %v453_v55, %v454_v58  ;;  %v459_v62 = vsub.f32 %v358_v32, %v439_v59  ;;  %v456_v1 = vsub.f32 %v355_v35, %v439_v59 }
  0x2c   : > { %v510_v32 = vrot.slane %v365_v24, %v509_v23 }
  0x2d   : > { %v460_v63 = vsub.f32 %v359_v33, %v447_v60  ;;  %v461_v0 = vsub.f32 %v360_v34, %v455_v61  ;;  %v468_v2 = vmul.f32 1.442695, %v459_v62  ;;  %v457_v3 = vsub.f32 %v356_v37, %v447_v60 }
  0x2e   : > { %v458_v5 = vsub.f32 %v357_v39, %v455_v61  ;;  %v462_v7 = vmul.f32 1.442695, %v456_v1  ;;  %v514_v33 = vrot.slane %v365_v24, %v513_v26  ;;  %v518_v34 = vrot.slane %v366_v27, %v509_v23 }
  0x2f   : > { %v470_v4 = vmul.f32 1.442695, %v460_v63  ;;  %v472_v6 = vmul.f32 1.442695, %v461_v0  ;;  %919 = vpow2.f32 %v468_v2  ;;  %v464_v9 = vmul.f32 1.442695, %v457_v3 }
  0x30   : > { %v466_v10 = vmul.f32 1.442695, %v458_v5  ;;  %v522_v39 = vrot.slane %v510_v32, %v509_v23  ;;  %v526_v40 = vrot.slane %v514_v33, %v509_v23  ;;  %v530_v41 = vrot.slane %v518_v34, %v509_v23 }
  0x31   : > { %921 = vpow2.f32 %v470_v4 }
  0x32   : > { %923 = vpow2.f32 %v472_v6  ;;  %vm534_vm6 = vcmp.eq.s32.totalorder %v522_v39, %v506_v38  ;;  %vm535_vm7 = vcmp.eq.s32.totalorder %v526_v40, %v506_v38  ;;  %vm536_vm8 = vcmp.eq.s32.totalorder %v530_v41, %v506_v38 }
  0x33   : > { %925 = vpow2.f32 %v462_v7  ;;  %v540_v47 = vsel %vm534_vm6, %v459_v62, 0.0  ;;  %vm531_vm9 = vcmp.eq.s32.totalorder %v522_v39, %v1115_v8  ;;  %vm532_vm10 = vcmp.eq.s32.totalorder %v526_v40, %v1115_v8 }
  0x34   : > { %927 = vpow2.f32 %v464_v9  ;;  %v541_v49 = vsel %vm535_vm7, %v460_v63, 0.0  ;;  %v542_v50 = vsel %vm536_vm8, %v461_v0, 0.0  ;;  %vm533_vm11 = vcmp.eq.s32.totalorder %v530_v41, %v1115_v8 }
  0x35   : > { %929 = vpow2.f32 %v466_v10  ;;  %v537_v53 = vsel %vm531_vm9, %v456_v1, 0.0  ;;  %v538_v54 = vsel %vm532_vm10, %v457_v3, 0.0  ;;  %v543_v55 = vsel %vm431_vm5, %v540_v47, 0.0 }
  0x36   : > { %v539_v57 = vsel %vm533_vm11, %v458_v5, 0.0  ;;  %v551_v58 = vsel %vm431_vm5, %v541_v49, 0.0  ;;  %v559_v59 = vsel %vm431_vm5, %v542_v50, 0.0  ;;  %v544_v61 = vadd.f32 %v543_v55, %v537_v53 }
  0x37   : > { %v552_v63 = vadd.f32 %v551_v58, %v538_v54  ;;  %v560_v0 = vadd.f32 %v559_v59, %v539_v57 }
  0x38   : > { %v545_v4 = vrot.slane %v544_v61, 4 }
  0x39   : > { %v553_v3 = vrot.slane %v552_v63, 4  ;;  %v561_v7 = vrot.slane %v560_v0, 4 }
  0x3a   : > { %v546_v10 = vadd.f32 %v545_v4, %v544_v61 }
  0x3b   : > { %v554_v5 = vadd.f32 %v553_v3, %v552_v63  ;;  %v562_v11 = vadd.f32 %v561_v7, %v560_v0 }
  0x3c   : > { %v920_v13 = vpop.eup %919 }
  0x3d   : > { %v474_v19 = vsel %vm431_vm5, %v920_v13, 0.0  ;;  %v547_v13 = vrot.slane %v546_v10, 2  ;;  %v563_v15 = vrot.slane %v562_v11, 2 }
  0x3e   : > { %v922_v14 = vpop.eup %921 }
  0x3f   : > { %v924_v16 = vpop.eup %923  ;;  %v482_v21 = vsel %vm431_vm5, %v922_v14, 0.0  ;;  %v555_v14 = vrot.slane %v554_v5, 2 }
  0x40   : > { %v926_v18 = vpop.eup %925  ;;  %v490_v25 = vsel %vm431_vm5, %v924_v16, 0.0 }
  0x41   : > { %v928_v20 = vpop.eup %927  ;;  %v475_v28 = vadd.f32 %v926_v18, %v474_v19 }
  0x42   : > { %v930_v22 = vpop.eup %929  ;;  %v483_v29 = vadd.f32 %v928_v20, %v482_v21  ;;  %v548_v20 = vadd.f32 %v547_v13, %v546_v10  ;;  %v556_v21 = vadd.f32 %v555_v14, %v554_v5  ;;  %v638_v13 = vsub.s32 1, %v1115_v8 }
  0x43   : > { %v491_v30 = vadd.f32 %v930_v22, %v490_v25  ;;  %v476_v35 = vrot.slane %v475_v28, 4  ;;  %v564_v22 = vadd.f32 %v563_v15, %v562_v11  ;;  %v642_v14 = vsub.s32 3, %v1115_v8 }
  0x44   : > { %v484_v36 = vrot.slane %v483_v29, 4 }
  0x45   : > { %v492_v37 = vrot.slane %v491_v30, 4  ;;  %v477_v42 = vadd.f32 %v476_v35, %v475_v28 }
  0x46   : > { %v485_v43 = vadd.f32 %v484_v36, %v483_v29  ;;  %v557_v36 = vrot.slane %v556_v21, 1 }
  0x47   : > { %v493_v44 = vadd.f32 %v492_v37, %v491_v30  ;;  %v478_v45 = vrot.slane %v477_v42, 2  ;;  %v549_v30 = vrot.slane %v548_v20, 1  ;;  %v565_v37 = vrot.slane %v564_v22, 1 }
  0x48   : > { %v486_v46 = vrot.slane %v485_v43, 2  ;;  %v558_v49 = vadd.f32 %v557_v36, %v556_v21 }
  0x49   : > { %v494_v48 = vrot.slane %v493_v44, 2  ;;  %v479_v51 = vadd.f32 %v478_v45, %v477_v42  ;;  %v550_v45 = vadd.f32 %v549_v30, %v548_v20  ;;  %v566_v50 = vadd.f32 %v565_v37, %v564_v22 }
  0x4a   : > { %v487_v52 = vadd.f32 %v486_v46, %v485_v43 }
  0x4b   : > { %v495_v56 = vadd.f32 %v494_v48, %v493_v44  ;;  %v480_v60 = vrot.slane %v479_v51, 1 }
  0x4c   : > { %v488_v62 = vrot.slane %v487_v52, 1 }
  0x4d   : > { %v496_v2 = vrot.slane %v495_v56, 1  ;;  %v481_v1 = vadd.f32 %v480_v60, %v479_v51 }
  0x4e   : > { %v489_v6 = vadd.f32 %v488_v62, %v487_v52 }
  0x4f   : > { %v497_v9 = vadd.f32 %v496_v2, %v495_v56  ;;  %931 = vlog2.f32 %v481_v1 }
  0x50   : > { %933 = vlog2.f32 %v489_v6 }
  0x51   : > { %935 = vlog2.f32 %v497_v9  ;;  %v1018_v9 = vmov 0.0  }
  0x52   : > { %v667_v10 = vsel %vm1134_vm4, 1.0, %v1018_v9 }
  0x5c   : > { %v932_v35 = vpop.eup %931 }
  0x5d   : > { %v934_v38 = vpop.eup %933  ;;  %v499_v41 = vmul.f32 0.6931472, %v932_v35 }
  0x5e   : > { %v936_v44 = vpop.eup %935  ;;  %v501_v48 = vmul.f32 0.6931472, %v934_v38 }
  0x5f   : > { %v503_v51 = vmul.f32 0.6931472, %v936_v44  ;;  %v607_v58 = vsub.f32 %v550_v45, %v499_v41 }
  0x60   : > { %v608_v59 = vsub.f32 %v558_v49, %v501_v48 }
  0x61   : > { %v609_v63 = vsub.f32 %v566_v50, %v503_v51 }
  0x91   : > { %v575_v16 = vpop.permute.xlu0 %574 }
  0x92   : > { %v580_v17 = vsel %vm534_vm6, %v575_v16, 0.0  ;;  %v581_v18 = vsel %vm535_vm7, %v575_v16, 0.0  ;;  %v582_v19 = vsel %vm536_vm8, %v575_v16, 0.0  ;;  %v672_v16 = vrot.slane %v667_v10, %v638_v13 }
  0x93   : > { %v583_v24 = vsel %vm431_vm5, %v580_v17, 0.0  ;;  %v591_v25 = vsel %vm431_vm5, %v581_v18, 0.0  ;;  %v599_v29 = vsel %vm431_vm5, %v582_v19, 0.0  ;;  %v646_v17 = vsub.s32 5, %v1115_v8 }
  0x94   : > { %v676_v18 = vrot.slane %v667_v10, %v642_v14  ;;  %v684_v22 = vsel %vm651_vm12, %v672_v16, 0.0 }
  0x95   : > { %v570_v23 = vpop.permute.xlu0 %569  ;;  %v680_v21 = vrot.slane %v667_v10, %v646_v17 }
  0x96   : > { %v577_v26 = vsel %vm531_vm9, %v570_v23, 0.0  ;;  %v578_v27 = vsel %vm532_vm10, %v570_v23, 0.0  ;;  %v579_v28 = vsel %vm533_vm11, %v570_v23, 0.0 }
  0x97   : > { %v584_v32 = vadd.f32 %v583_v24, %v577_v26  ;;  %v592_v33 = vadd.f32 %v591_v25, %v578_v27  ;;  %v600_v34 = vadd.f32 %v599_v29, %v579_v28 }
  0x99   : > { %v585_v42 = vrot.slane %v584_v32, 4  ;;  %v593_v43 = vrot.slane %v592_v33, 4  ;;  %v601_v39 = vrot.slane %v600_v34, 4 }
  0x9b   : > { %v586_v40 = vadd.f32 %v585_v42, %v584_v32  ;;  %v594_v46 = vadd.f32 %v593_v43, %v592_v33  ;;  %v602_v47 = vadd.f32 %v601_v39, %v600_v34  ;;  %v687_v32 = vsel %vm651_vm12, %v680_v21, 0.0 }
  0x9d   : > { %v587_v52 = vrot.slane %v586_v40, 2  ;;  %v595_v53 = vrot.slane %v594_v46, 2  ;;  %v603_v54 = vrot.slane %v602_v47, 2 }
  0x9f   : > { %v588_v55 = vadd.f32 %v587_v52, %v586_v40  ;;  %v596_v56 = vadd.f32 %v595_v53, %v594_v46  ;;  %v604_v57 = vadd.f32 %v603_v54, %v602_v47 }
  0xa1   : > { %v589_v60 = vrot.slane %v588_v55, 1  ;;  %v597_v61 = vrot.slane %v596_v56, 1  ;;  %v605_v62 = vrot.slane %v604_v57, 1 }
  0xa3   : > { %v590_v0 = vadd.f32 %v589_v60, %v588_v55  ;;  %v598_v2 = vadd.f32 %v597_v61, %v596_v56  ;;  %v606_v1 = vadd.f32 %v605_v62, %v604_v57 }
  0xa5   : > { %v610_v4 = vmul.f32 %v607_v58, %v590_v0  ;;  %v611_v6 = vmul.f32 %v608_v59, %v598_v2  ;;  %v612_v3 = vmul.f32 %v609_v63, %v606_v1 }
  0xa7   : > { %v616_v7 = vcombine.low %v610_v4, %v611_v6  ;;  %v630_v11 = vrot.slane %v612_v3, %v1119_v12 }
  0xa9   : > { %v623_v5 = vrot.slane %v616_v7, %v1119_v12  ;;  %v685_v12 = vsel %vm651_vm12, %v676_v18, 0.0 }
  0xaa   : > { %v686_v29 = vadd.f32 %v685_v12, %v684_v22 }
  0xab   : > { %v631_v15 = vcombine.low %v623_v5, %v630_v11 }
  0xac   : > { %v688_v34 = vadd.f32 %v687_v32, %v686_v29 }
  0xad   : > { %v632_v19 = vrot.slane %v631_v15, 7 }
  0xaf   : > { %v634_v20 = vsel %vm1134_vm4, %v632_v19, 0.0 }
  0xb0   : > { %v639_v23 = vrot.slane %v634_v20, %v638_v13  ;;  %v643_v24 = vrot.slane %v634_v20, %v642_v14  ;;  %v647_v25 = vrot.slane %v634_v20, %v646_v17 }
  0xb2   : > { %v652_v26 = vsel %vm651_vm12, %v639_v23, 0.0  ;;  %v653_v27 = vsel %vm651_vm12, %v643_v24, 0.0  ;;  %v655_v30 = vsel %vm651_vm12, %v647_v25, 0.0 }
  0xb3   : > { %v654_v28 = vadd.f32 %v653_v27, %v652_v26 }
  0xb5   : > { %v656_v33 = vadd.f32 %v655_v30, %v654_v28 }
  0xb7   : > { %657 = vadd.xlane.f32.xlu1 %v656_v33 }
  0xbb   : > { %689 = vadd.xlane.f32.xlu1 %v688_v34 }
 0x140   : > { %v658_v35 = vpop.xlane.xlu1 %657 }
 0x141   : > { %v659_v31 = vrot.slane %v658_v35, 4 }
 0x143   : > { %v660_v36 = vadd.f32 %v659_v31, %v658_v35 }
 0x144   : > { %v690_v37 = vpop.xlane.xlu1 %689 }
 0x145   : > { %v661_v38 = vrot.slane %v660_v36, 2  ;;  %v691_v42 = vrot.slane %v690_v37, 4 }
 0x147   : > { %v692_v43 = vadd.f32 %v691_v42, %v690_v37  ;;  %v662_v39 = vadd.f32 %v661_v38, %v660_v36 }
 0x149   : > { %v693_v44 = vrot.slane %v692_v43, 2  ;;  %v663_v45 = vrot.slane %v662_v39, 1 }
 0x14b   : > { %v694_v40 = vadd.f32 %v693_v44, %v692_v43  ;;  %v664_v46 = vadd.f32 %v663_v45, %v662_v39 }
 0x14d   : > { %855 = vpush %v664_v46  ;;  %v695_v47 = vrot.slane %v694_v40, 1 }
 0x14f   : > { %v696_v41 = vadd.f32 %v695_v47, %v694_v40 }
 0x151   : > { %857 = vpush %v696_v41 }
 0x17e   : > { %s856_s14 = spop %855 }
 0x17f   : > { %s666_s15 = ssub.f32 0.0, %s856_s14 }
 0x181   : > { %v699_v48 = vstv %s666_s15 }
 0x182   : > { %s858_s25 = spop %857 }
 0x183   : > { %v700_v49 = vstv %s858_s25 }
 0x184   : > { %v701_v50 = vsel %vm698_vm13, %v699_v48, %v700_v49 }
 0x185   : > { %702 = vst [vmem:[%s316_s17] sm:$0x3] %v701_v50 }
 0x186   : > { %950 = shalt.err (!%p947_p5)
}
 0x187   : > { %s951_s12 = scalar_lea.hbm %s1198_s7, 32  ;;  %s955_s15 = scalar_lea.hbm %s1243_s5, 64 }
 0x188   : > { %p952_p6 = scmp.ne.s32.totalorder %s1198_s7, %s951_s12  ;;  %p956_p10 = scmp.lt.s32.totalorder %s1198_s7, %s1243_s5 }
 0x189   : > { %p957_p11 = scmp.lt.s32.totalorder %s955_s15, %s951_s12 }
 0x18a   : > { %p953_p7 = pnand %p952_p6, %p1090_p4 }
 0x18b   : > { %p958_p12 = por %p957_p11, %p956_p10 }
 0x18c   : > { %p954_p9 = pneg %p953_p7 }
 0x18e   : > { %p959_p13 = pnand %p958_p12, %p954_p9 }
 0x190   : > { %962 = shalt.err (!%p959_p13)
}
 0x191   : > { %859 = dma.vmem_to_hbm [thread:$0]  (%p1090_p4), %s719_s24, 32, %s1198_s7, %s704_s8  }
 0x192 PF: > { %p865_p0 = scmp.ge.s32.totalorder %s1013_s23, 2  ;;  %s730_s25 = sand.u32 1, %s993_s18  }
 0x193   : > { %s731_s27 = scalar_lea.sflag [#allocation3], %s730_s25 }
 0x194   : > { %p862_p1 = pnand %p865_p0, %p1097_p8 }
 0x196   : > { %p863_p2 = pneg %p862_p1 }
 0x198   : > { %988 = dma.done.wait (%p863_p2), %s731_s27, 32  }
 0x199   : > { %990 = vsyncadd (%p863_p2), %s731_s27, 4294967264  ;;  %s18_s23 = sadd.s32 1, %s1013_s23   ;;  %s1248_s18 = smov %s997_s19 }
 0x19a   : > { %p15_p3 = scmp.ge.s32.totalorder %s18_s23, 4   ;;  %s1249_s19 = smov %s1001_s20 }
 0x19b   : > { %s1250_s20 = smov %s1103_s6  ;;  %s1251_s21 = smov %s1009_s22 }
 0x19c   : > { %s1252_s22 = smov %s1254_s26  ;;  %17 = sbr.rel (!%p15_p3) target bundleno = 4 (0x4), region = 84 }
 0x1a1   :  { %736 = vsyncpa [#allocation3], 1 }
 0x1a2   :  { %738 = vsyncpa [#allocation3 + $0x1], 1 }

</bundles_post_ra>
